<compile_context>
chip_gen: v7x
topology: tpu7x:2x2x1
jax: 0.10.0
libtpu: 0.0.40
codegen_flags: <defaults>
</compile_context>

<pallas_src>
import functools

import jax
import jax.numpy as jnp
from jax.experimental import pallas as pl
from jax.experimental.pallas import tpu as pltpu


def _mcvae_kernel(
    x_ref, y_ref, eps_ref,
    wxf_ref, wqy_ref, bq_ref,          # fused x-projection, y-half of q_y, bias
    wmulv_ref, bmulv_ref,              # fused [mu | logvar] head
    wp1z_ref, bp1_ref,                 # z-half of proj[0], bias
    wp2_ref, bp2_ref,                  # proj[2]
    yhat_ref, mulv_ref, kl_ref,
):
    Z = wp1z_ref.shape[0]

    x = x_ref[...]                              # (TB, D) bf16
    y = y_ref[...]                              # (TB, D) bf16
    eps = eps_ref[...].astype(jnp.float32)      # (TB, Z) f32

    # Fused x projection: x @ [Wq_x | Wp1_x]  -> (TB, 2Z), f32 accumulation.
    xc = jnp.dot(x, wxf_ref[...], preferred_element_type=jnp.float32)
    x_q = xc[:, :Z]                             # x-contribution to q_y pre-act
    x_h = xc[:, Z:]                             # x-contribution to proj[0] pre-act

    # q_y = tanh(Linear(cat([x, y])))
    q = jnp.tanh(
        x_q
        + jnp.dot(y, wqy_ref[...], preferred_element_type=jnp.float32)
        + bq_ref[...]
    )                                           # (TB, Z) f32

    # Fused mu / logvar head: q @ [Wmu | Wlv] -> (TB, 2Z) lane-dense slab.
    mulv = (
        jnp.dot(q.astype(jnp.bfloat16), wmulv_ref[...],
                preferred_element_type=jnp.float32)
        + bmulv_ref[...]
    )
    mu = mulv[:, :Z]
    logvar = mulv[:, Z:]

    # Reparameterization: z = eps * exp(0.5 * logvar) + mu
    std = jnp.exp(0.5 * logvar)
    zlat = eps * std + mu                       # (TB, Z) f32

    # proj = Linear(Z -> D)(tanh(Linear(cat([x, z]) -> Z)))
    h = jnp.tanh(
        x_h
        + jnp.dot(zlat.astype(jnp.bfloat16), wp1z_ref[...],
                  preferred_element_type=jnp.float32)
        + bp1_ref[...]
    )                                           # (TB, Z) f32
    y_hat = (
        jnp.dot(h.astype(jnp.bfloat16), wp2_ref[...],
                preferred_element_type=jnp.float32)
        + bp2_ref[...]
    )                                           # (TB, D) f32

    yhat_ref[...] = y_hat.astype(yhat_ref.dtype)
    mulv_ref[...] = mulv.astype(mulv_ref.dtype)

    # Per-row KL: -0.5 * sum(1 + logvar - mu^2 - exp(logvar))
    #   exp(logvar) == std*std (reuse EUP result); fold the "+1" into +Z.
    kl = -0.5 * (
        jnp.float32(Z)
        + jnp.sum(logvar - mu * mu - std * std, axis=1, keepdims=True)
    )
    kl_ref[...] = kl.astype(kl_ref.dtype)


def pack_params(params):
    """Fuse shared-LHS weight matrices and cast matmul weights to bf16."""
    f = jnp.bfloat16
    return {
        # x @ [Wq_x | Wp1_x]   (D, 2Z)
        "w_x_fused": jnp.concatenate(
            [params["w_q_x"], params["w_p1_x"]], axis=1).astype(f),
        "w_q_y": params["w_q_y"].astype(f),                        # (D, Z)
        "b_q": params["b_q"].astype(jnp.float32),                  # (1, Z)
        # q @ [Wmu | Wlv]      (Z, 2Z)
        "w_mulv": jnp.concatenate(
            [params["w_mu"], params["w_lv"]], axis=1).astype(f),
        "b_mulv": jnp.concatenate(
            [params["b_mu"], params["b_lv"]], axis=1).astype(jnp.float32),
        "w_p1_z": params["w_p1_z"].astype(f),                      # (Z, Z)
        "b_p1": params["b_p1"].astype(jnp.float32),                # (1, Z)
        "w_p2": params["w_p2"].astype(f),                          # (Z, D)
        "b_p2": params["b_p2"].astype(jnp.float32),                # (1, D)
    }


def mcvae_head_forward(packed, x_embeds, y_embeds, eps, labels=None):
    """Runs the MCVAEHead forward pass.  Returns (y_hat, logvar, mu, loss)."""
    # glue: ground-truth class-embedding gather (PyTorch .gather).
    # TODO(synk): the per-row dynamic class index gather stays in the XLA
    # wrapper; a per-row pl.Element block would force a batch tile of 1.
    if y_embeds.ndim == 3:
        assert labels is not None
        y_embeds = jnp.take_along_axis(
            y_embeds, labels[:, None, None], axis=1
        ).squeeze(1)                                   # (B, D)

    B, D = x_embeds.shape
    Z = packed["w_p1_z"].shape[0]

    # Batch tile: full batch if small, else 512-row tiles (amortize per-step
    # overhead; still comfortably inside VMEM for typical D/Z).
    TB = B if B <= 512 else 512
    grid = (pl.cdiv(B, TB),)

    xb = x_embeds.astype(jnp.bfloat16)
    yb = y_embeds.astype(jnp.bfloat16)
    epsf = eps.astype(jnp.float32)

    row = lambda i: (i, 0)      # batch-streamed tiles
    rep = lambda i: (0, 0)      # VMEM-resident weights / biases

    # VMEM budget (double-buffer everything, generous margin), capped for v7x.
    weight_bytes = sum(int(v.size) * v.dtype.itemsize for v in packed.values())
    tile_bytes = TB * (2 * D * 2 + Z * 4) + TB * (D * 4 + 2 * Z * 4 + 4)
    vmem_limit = int(min(64 << 20, max(32 << 20,
                                       4 * (weight_bytes + tile_bytes) + (8 << 20))))

    flops = 2 * B * (D * 2 * Z + D * Z + Z * 2 * Z + Z * Z + Z * D)
    transcendentals = 3 * B * Z                      # 2x tanh + 1x exp per latent
    bytes_accessed = (xb.size * 2 + yb.size * 2 + epsf.size * 4
                      + weight_bytes
                      + B * D * x_embeds.dtype.itemsize + B * 2 * Z * 4 + B * 4)

    kernel = pl.pallas_call(
        _mcvae_kernel,
        grid=grid,
        out_shape=(
            jax.ShapeDtypeStruct((B, D), x_embeds.dtype),   # y_hat
            jax.ShapeDtypeStruct((B, 2 * Z), jnp.float32),  # [mu | logvar] slab
            jax.ShapeDtypeStruct((B, 1), jnp.float32),      # per-row KL
        ),
        in_specs=[
            pl.BlockSpec((TB, D), row),          # x
            pl.BlockSpec((TB, D), row),          # y
            pl.BlockSpec((TB, Z), row),          # eps
            pl.BlockSpec((D, 2 * Z), rep),       # w_x_fused
            pl.BlockSpec((D, Z), rep),           # w_q_y
            pl.BlockSpec((1, Z), rep),           # b_q
            pl.BlockSpec((Z, 2 * Z), rep),       # w_mulv
            pl.BlockSpec((1, 2 * Z), rep),       # b_mulv
            pl.BlockSpec((Z, Z), rep),           # w_p1_z
            pl.BlockSpec((1, Z), rep),           # b_p1
            pl.BlockSpec((Z, D), rep),           # w_p2
            pl.BlockSpec((1, D), rep),           # b_p2
        ],
        out_specs=(
            pl.BlockSpec((TB, D), row),
            pl.BlockSpec((TB, 2 * Z), row),
            pl.BlockSpec((TB, 1), row),
        ),
        compiler_params=pltpu.CompilerParams(
            dimension_semantics=("parallel",),
            vmem_limit_bytes=vmem_limit,
        ),
        cost_estimate=pl.CostEstimate(
            flops=int(flops),
            transcendentals=int(transcendentals),
            bytes_accessed=int(bytes_accessed),
        ),
    )

    y_hat, mulv, kl = kernel(
        xb, yb, epsf,
        packed["w_x_fused"], packed["w_q_y"], packed["b_q"],
        packed["w_mulv"], packed["b_mulv"],
        packed["w_p1_z"], packed["b_p1"],
        packed["w_p2"], packed["b_p2"],
    )
    mu = mulv[:, :Z]
    logvar = mulv[:, Z:]
    loss = jnp.mean(kl[:, 0])
    return y_hat, logvar, mu, loss


def init_params(key, model_dim, z):
    """Deterministic init matching the nn.Linear shapes of MCVAEHead.__init__.

    Weights are stored transposed relative to PyTorch: (in_features, out_features).
    The cat-input layers are pre-split into the x-half and the y/z-half.
    """
    def uinit(k, shape, fan_in):
        bound = 1.0 / jnp.sqrt(jnp.float32(fan_in))
        return jax.random.uniform(k, shape, jnp.float32, -bound, bound)

    ks = jax.random.split(key, 10)
    D, Z = model_dim, z
    params = {
        # q_y : Linear(2D -> Z), split into the x-half and y-half
        "w_q_x": uinit(ks[0], (D, Z), 2 * D),
        "w_q_y": uinit(ks[1], (D, Z), 2 * D),
        "b_q":   uinit(ks[2], (1, Z), 2 * D),
        # mu / log_var : Linear(Z -> Z)
        "w_mu":  uinit(ks[3], (Z, Z), Z),
        "b_mu":  uinit(ks[4], (1, Z), Z),
        "w_lv":  uinit(ks[5], (Z, Z), Z),
        "b_lv":  uinit(ks[6], (1, Z), Z),
        # proj[0] : Linear(D + Z -> Z), split into x-half and z-half
        "w_p1_x": uinit(ks[7], (D, Z), D + Z),
        "w_p1_z": uinit(ks[8], (Z, Z), D + Z),
        "b_p1":   uinit(ks[9], (1, Z), D + Z),
    }
    ks2 = jax.random.split(jax.random.fold_in(key, 123), 2)
    # proj[2] : Linear(Z -> D)
    params["w_p2"] = uinit(ks2[0], (Z, D), Z)
    params["b_p2"] = uinit(ks2[1], (1, D), Z)
    return params


def reference_forward(packed, x, y3, eps, labels, Z):
    """Pure-JAX reference with the same bf16 matmul / f32-elementwise recipe."""
    y = jnp.take_along_axis(y3, labels[:, None, None], axis=1).squeeze(1)
    xb = x.astype(jnp.bfloat16)
    yb = y.astype(jnp.bfloat16)
    dot = functools.partial(jnp.dot, preferred_element_type=jnp.float32)

    xc = dot(xb, packed["w_x_fused"])
    q = jnp.tanh(xc[:, :Z] + dot(yb, packed["w_q_y"]) + packed["b_q"])
    mulv = dot(q.astype(jnp.bfloat16), packed["w_mulv"]) + packed["b_mulv"]
    mu, logvar = mulv[:, :Z], mulv[:, Z:]
    std = jnp.exp(0.5 * logvar)
    zlat = eps * std + mu
    h = jnp.tanh(xc[:, Z:] + dot(zlat.astype(jnp.bfloat16), packed["w_p1_z"])
                 + packed["b_p1"])
    y_hat = dot(h.astype(jnp.bfloat16), packed["w_p2"]) + packed["b_p2"]
    loss = jnp.mean(-0.5 * jnp.sum(1.0 + logvar - mu ** 2 - jnp.exp(logvar), axis=1))
    return y_hat.astype(x.dtype), logvar, mu, loss


if __name__ == "__main__":
    B, C, D, Z = 8, 4, 32, 16  # batch, num classes, model_dim, latent z

    key = jax.random.PRNGKey(0)
    k_x, k_y, k_eps, k_lab, k_par = jax.random.split(key, 5)

    x_embeds = jax.random.normal(k_x, (B, D), jnp.float32)
    y_embeds = jax.random.normal(k_y, (B, C, D), jnp.float32)
    labels = jax.random.randint(k_lab, (B,), 0, C)
    eps = jax.random.normal(k_eps, (B, Z), jnp.float32)  # torch.randn_like(std)

    params = init_params(k_par, D, Z)
    packed = pack_params(params)

    y_hat, logvar, mu, loss = mcvae_head_forward(packed, x_embeds, y_embeds, eps, labels)
    jax.block_until_ready((y_hat, logvar, mu, loss))

    # sanity check against a plain-JAX reference using the same bf16 recipe
    ry, rlv, rmu, rloss = reference_forward(packed, x_embeds, y_embeds, eps, labels, Z)
    assert jnp.allclose(y_hat, ry, atol=2e-2, rtol=2e-2)
    assert jnp.allclose(logvar, rlv, atol=2e-2, rtol=2e-2)
    assert jnp.allclose(mu, rmu, atol=2e-2, rtol=2e-2)
    assert jnp.allclose(loss, rloss, atol=2e-2, rtol=2e-2)

    print("KERNEL_OK")
</pallas_src>

<mosaic_0001>
module attributes {stable_mosaic.version = 11 : i64} {
  func.func @_mcvae_kernel(%arg0: i32, %arg1: memref<8x32xbf16, #tpu.memory_space<vmem>>, %arg2: memref<8x32xbf16, #tpu.memory_space<vmem>>, %arg3: memref<8x16xf32, #tpu.memory_space<vmem>>, %arg4: memref<32x32xbf16, #tpu.memory_space<vmem>>, %arg5: memref<32x16xbf16, #tpu.memory_space<vmem>>, %arg6: memref<1x16xf32, #tpu.memory_space<vmem>>, %arg7: memref<16x32xbf16, #tpu.memory_space<vmem>>, %arg8: memref<1x32xf32, #tpu.memory_space<vmem>>, %arg9: memref<16x16xbf16, #tpu.memory_space<vmem>>, %arg10: memref<1x16xf32, #tpu.memory_space<vmem>>, %arg11: memref<16x32xbf16, #tpu.memory_space<vmem>>, %arg12: memref<1x32xf32, #tpu.memory_space<vmem>>, %arg13: memref<8x32xf32, #tpu.memory_space<vmem>>, %arg14: memref<8x32xf32, #tpu.memory_space<vmem>>, %arg15: memref<8x1xf32, #tpu.memory_space<vmem>>) attributes {dimension_semantics = [#tpu.dimension_semantics<parallel>], iteration_bounds = array<i64: 1>, scalar_prefetch = 0 : i64, scratch_operands = 0 : i64, tpu.core_type = #tpu.core_type<tc>, window_params = [{transform_indices = @transform_0, window_bounds = array<i64: 8, 32>}, {transform_indices = @transform_1, window_bounds = array<i64: 8, 32>}, {transform_indices = @transform_2, window_bounds = array<i64: 8, 16>}, {pipeline_mode = #tpu.pipeline_mode<synchronous>, transform_indices = @transform_3, window_bounds = array<i64: 32, 32>}, {pipeline_mode = #tpu.pipeline_mode<synchronous>, transform_indices = @transform_4, window_bounds = array<i64: 32, 16>}, {pipeline_mode = #tpu.pipeline_mode<synchronous>, transform_indices = @transform_5, window_bounds = array<i64: 1, 16>}, {pipeline_mode = #tpu.pipeline_mode<synchronous>, transform_indices = @transform_6, window_bounds = array<i64: 16, 32>}, {pipeline_mode = #tpu.pipeline_mode<synchronous>, transform_indices = @transform_7, window_bounds = array<i64: 1, 32>}, {pipeline_mode = #tpu.pipeline_mode<synchronous>, transform_indices = @transform_8, window_bounds = array<i64: 16, 16>}, {pipeline_mode = #tpu.pipeline_mode<synchronous>, transform_indices = @transform_9, window_bounds = array<i64: 1, 16>}, {pipeline_mode = #tpu.pipeline_mode<synchronous>, transform_indices = @transform_10, window_bounds = array<i64: 16, 32>}, {pipeline_mode = #tpu.pipeline_mode<synchronous>, transform_indices = @transform_11, window_bounds = array<i64: 1, 32>}, {transform_indices = @transform_12, window_bounds = array<i64: 8, 32>}, {transform_indices = @transform_13, window_bounds = array<i64: 8, 32>}, {transform_indices = @transform_14, window_bounds = array<i64: 8, 1>}]} {
    %c0 = arith.constant 0 : index
    %c0_0 = arith.constant 0 : index
    %0 = vector.load %arg1[%c0, %c0_0] : memref<8x32xbf16, #tpu.memory_space<vmem>>, vector<8x32xbf16>
    %c0_1 = arith.constant 0 : index
    %c0_2 = arith.constant 0 : index
    %1 = vector.load %arg2[%c0_1, %c0_2] : memref<8x32xbf16, #tpu.memory_space<vmem>>, vector<8x32xbf16>
    %c0_3 = arith.constant 0 : index
    %c0_4 = arith.constant 0 : index
    %2 = vector.load %arg3[%c0_3, %c0_4] : memref<8x16xf32, #tpu.memory_space<vmem>>, vector<8x16xf32>
    %c0_5 = arith.constant 0 : index
    %c0_6 = arith.constant 0 : index
    %3 = vector.load %arg4[%c0_5, %c0_6] : memref<32x32xbf16, #tpu.memory_space<vmem>>, vector<32x32xbf16>
    %cst = arith.constant dense<0.000000e+00> : vector<8x32xf32>
    %4 = tpu.matmul %0, %3, %cst {dimension_numbers = #tpu.dot_dimension_numbers<[1], [0], [0], [1], [0, 0, 1, 1], [], []>} : vector<8x32xbf16>, vector<32x32xbf16>, vector<8x32xf32> -> vector<8x32xf32>
    %5 = vector.extract_strided_slice %4 {offsets = [0, 0], sizes = [8, 16], strides = [1, 1]} : vector<8x32xf32> to vector<8x16xf32>
    %6 = vector.extract_strided_slice %4 {offsets = [0, 16], sizes = [8, 16], strides = [1, 1]} : vector<8x32xf32> to vector<8x16xf32>
    %c0_7 = arith.constant 0 : index
    %c0_8 = arith.constant 0 : index
    %7 = vector.load %arg5[%c0_7, %c0_8] : memref<32x16xbf16, #tpu.memory_space<vmem>>, vector<32x16xbf16>
    %cst_9 = arith.constant dense<0.000000e+00> : vector<8x16xf32>
    %8 = tpu.matmul %1, %7, %cst_9 {dimension_numbers = #tpu.dot_dimension_numbers<[1], [0], [0], [1], [0, 0, 1, 1], [], []>} : vector<8x32xbf16>, vector<32x16xbf16>, vector<8x16xf32> -> vector<8x16xf32>
    %9 = arith.addf %5, %8 : vector<8x16xf32>
    %c0_10 = arith.constant 0 : index
    %c0_11 = arith.constant 0 : index
    %10 = vector.load %arg6[%c0_10, %c0_11] : memref<1x16xf32, #tpu.memory_space<vmem>>, vector<1x16xf32>
    %11 = vector.broadcast %10 : vector<1x16xf32> to vector<8x16xf32>
    %12 = arith.addf %9, %11 : vector<8x16xf32>
    %13 = math.tanh %12 : vector<8x16xf32>
    %14 = arith.truncf %13 : vector<8x16xf32> to vector<8x16xbf16>
    %c0_12 = arith.constant 0 : index
    %c0_13 = arith.constant 0 : index
    %15 = vector.load %arg7[%c0_12, %c0_13] : memref<16x32xbf16, #tpu.memory_space<vmem>>, vector<16x32xbf16>
    %cst_14 = arith.constant dense<0.000000e+00> : vector<8x32xf32>
    %16 = tpu.matmul %14, %15, %cst_14 {dimension_numbers = #tpu.dot_dimension_numbers<[1], [0], [0], [1], [0, 0, 1, 1], [], []>} : vector<8x16xbf16>, vector<16x32xbf16>, vector<8x32xf32> -> vector<8x32xf32>
    %c0_15 = arith.constant 0 : index
    %c0_16 = arith.constant 0 : index
    %17 = vector.load %arg8[%c0_15, %c0_16] : memref<1x32xf32, #tpu.memory_space<vmem>>, vector<1x32xf32>
    %18 = vector.broadcast %17 : vector<1x32xf32> to vector<8x32xf32>
    %19 = arith.addf %16, %18 : vector<8x32xf32>
    %20 = vector.extract_strided_slice %19 {offsets = [0, 0], sizes = [8, 16], strides = [1, 1]} : vector<8x32xf32> to vector<8x16xf32>
    %21 = vector.extract_strided_slice %19 {offsets = [0, 16], sizes = [8, 16], strides = [1, 1]} : vector<8x32xf32> to vector<8x16xf32>
    %cst_17 = arith.constant 5.000000e-01 : f32
    %22 = vector.broadcast %cst_17 : f32 to vector<8x16xf32>
    %23 = arith.mulf %22, %21 : vector<8x16xf32>
    %24 = math.exp %23 : vector<8x16xf32>
    %25 = arith.mulf %2, %24 : vector<8x16xf32>
    %26 = arith.addf %25, %20 : vector<8x16xf32>
    %27 = arith.truncf %26 : vector<8x16xf32> to vector<8x16xbf16>
    %c0_18 = arith.constant 0 : index
    %c0_19 = arith.constant 0 : index
    %28 = vector.load %arg9[%c0_18, %c0_19] : memref<16x16xbf16, #tpu.memory_space<vmem>>, vector<16x16xbf16>
    %cst_20 = arith.constant dense<0.000000e+00> : vector<8x16xf32>
    %29 = tpu.matmul %27, %28, %cst_20 {dimension_numbers = #tpu.dot_dimension_numbers<[1], [0], [0], [1], [0, 0, 1, 1], [], []>} : vector<8x16xbf16>, vector<16x16xbf16>, vector<8x16xf32> -> vector<8x16xf32>
    %30 = arith.addf %6, %29 : vector<8x16xf32>
    %c0_21 = arith.constant 0 : index
    %c0_22 = arith.constant 0 : index
    %31 = vector.load %arg10[%c0_21, %c0_22] : memref<1x16xf32, #tpu.memory_space<vmem>>, vector<1x16xf32>
    %32 = vector.broadcast %31 : vector<1x16xf32> to vector<8x16xf32>
    %33 = arith.addf %30, %32 : vector<8x16xf32>
    %34 = math.tanh %33 : vector<8x16xf32>
    %35 = arith.truncf %34 : vector<8x16xf32> to vector<8x16xbf16>
    %c0_23 = arith.constant 0 : index
    %c0_24 = arith.constant 0 : index
    %36 = vector.load %arg11[%c0_23, %c0_24] : memref<16x32xbf16, #tpu.memory_space<vmem>>, vector<16x32xbf16>
    %cst_25 = arith.constant dense<0.000000e+00> : vector<8x32xf32>
    %37 = tpu.matmul %35, %36, %cst_25 {dimension_numbers = #tpu.dot_dimension_numbers<[1], [0], [0], [1], [0, 0, 1, 1], [], []>} : vector<8x16xbf16>, vector<16x32xbf16>, vector<8x32xf32> -> vector<8x32xf32>
    %c0_26 = arith.constant 0 : index
    %c0_27 = arith.constant 0 : index
    %38 = vector.load %arg12[%c0_26, %c0_27] : memref<1x32xf32, #tpu.memory_space<vmem>>, vector<1x32xf32>
    %39 = vector.broadcast %38 : vector<1x32xf32> to vector<8x32xf32>
    %40 = arith.addf %37, %39 : vector<8x32xf32>
    %c0_28 = arith.constant 0 : index
    %c0_29 = arith.constant 0 : index
    %41 = vector.load %arg13[%c0_28, %c0_29] : memref<8x32xf32, #tpu.memory_space<vmem>>, vector<8x32xf32>
    tpu.vector_store %arg13[%c0_28, %c0_29], %40 {strides = array<i32>} : memref<8x32xf32, #tpu.memory_space<vmem>>, vector<8x32xf32>,
    %c0_30 = arith.constant 0 : index
    %c0_31 = arith.constant 0 : index
    %42 = vector.load %arg14[%c0_30, %c0_31] : memref<8x32xf32, #tpu.memory_space<vmem>>, vector<8x32xf32>
    tpu.vector_store %arg14[%c0_30, %c0_31], %19 {strides = array<i32>} : memref<8x32xf32, #tpu.memory_space<vmem>>, vector<8x32xf32>,
    %43 = arith.mulf %20, %20 : vector<8x16xf32>
    %44 = arith.subf %21, %43 : vector<8x16xf32>
    %45 = arith.mulf %24, %24 : vector<8x16xf32>
    %46 = arith.subf %44, %45 : vector<8x16xf32>
    %cst_32 = arith.constant dense<0.000000e+00> : vector<8xf32>
    %47 = vector.multi_reduction <add>, %46, %cst_32 [1] : vector<8x16xf32> to vector<8xf32>
    %48 = vector.shape_cast %47 : vector<8xf32> to vector<8x1xf32>
    %cst_33 = arith.constant 1.600000e+01 : f32
    %49 = vector.broadcast %cst_33 : f32 to vector<8x1xf32>
    %50 = arith.addf %49, %48 : vector<8x1xf32>
    %cst_34 = arith.constant -5.000000e-01 : f32
    %51 = vector.broadcast %cst_34 : f32 to vector<8x1xf32>
    %52 = arith.mulf %51, %50 : vector<8x1xf32>
    %c0_35 = arith.constant 0 : index
    %c0_36 = arith.constant 0 : index
    %53 = vector.load %arg15[%c0_35, %c0_36] : memref<8x1xf32, #tpu.memory_space<vmem>>, vector<8x1xf32>
    tpu.vector_store %arg15[%c0_35, %c0_36], %52 {strides = array<i32>} : memref<8x1xf32, #tpu.memory_space<vmem>>, vector<8x1xf32>,
    return
  }
  func.func @transform_0(%arg0: i32) -> (i32, i32) {
    %c0_i32 = arith.constant 0 : i32
    %c0_i32_0 = arith.constant 0 : i32
    return %arg0, %c0_i32 : i32, i32
  }
  func.func @transform_1(%arg0: i32) -> (i32, i32) {
    %c0_i32 = arith.constant 0 : i32
    %c0_i32_0 = arith.constant 0 : i32
    return %arg0, %c0_i32 : i32, i32
  }
  func.func @transform_2(%arg0: i32) -> (i32, i32) {
    %c0_i32 = arith.constant 0 : i32
    %c0_i32_0 = arith.constant 0 : i32
    return %arg0, %c0_i32 : i32, i32
  }
  func.func @transform_3(%arg0: i32) -> (i32, i32) {
    %c0_i32 = arith.constant 0 : i32
    %c0_i32_0 = arith.constant 0 : i32
    %c0_i32_1 = arith.constant 0 : i32
    return %c0_i32, %c0_i32_0 : i32, i32
  }
  func.func @transform_4(%arg0: i32) -> (i32, i32) {
    %c0_i32 = arith.constant 0 : i32
    %c0_i32_0 = arith.constant 0 : i32
    %c0_i32_1 = arith.constant 0 : i32
    return %c0_i32, %c0_i32_0 : i32, i32
  }
  func.func @transform_5(%arg0: i32) -> (i32, i32) {
    %c0_i32 = arith.constant 0 : i32
    %c0_i32_0 = arith.constant 0 : i32
    %c0_i32_1 = arith.constant 0 : i32
    return %c0_i32, %c0_i32_0 : i32, i32
  }
  func.func @transform_6(%arg0: i32) -> (i32, i32) {
    %c0_i32 = arith.constant 0 : i32
    %c0_i32_0 = arith.constant 0 : i32
    %c0_i32_1 = arith.constant 0 : i32
    return %c0_i32, %c0_i32_0 : i32, i32
  }
  func.func @transform_7(%arg0: i32) -> (i32, i32) {
    %c0_i32 = arith.constant 0 : i32
    %c0_i32_0 = arith.constant 0 : i32
    %c0_i32_1 = arith.constant 0 : i32
    return %c0_i32, %c0_i32_0 : i32, i32
  }
  func.func @transform_8(%arg0: i32) -> (i32, i32) {
    %c0_i32 = arith.constant 0 : i32
    %c0_i32_0 = arith.constant 0 : i32
    %c0_i32_1 = arith.constant 0 : i32
    return %c0_i32, %c0_i32_0 : i32, i32
  }
  func.func @transform_9(%arg0: i32) -> (i32, i32) {
    %c0_i32 = arith.constant 0 : i32
    %c0_i32_0 = arith.constant 0 : i32
    %c0_i32_1 = arith.constant 0 : i32
    return %c0_i32, %c0_i32_0 : i32, i32
  }
  func.func @transform_10(%arg0: i32) -> (i32, i32) {
    %c0_i32 = arith.constant 0 : i32
    %c0_i32_0 = arith.constant 0 : i32
    %c0_i32_1 = arith.constant 0 : i32
    return %c0_i32, %c0_i32_0 : i32, i32
  }
  func.func @transform_11(%arg0: i32) -> (i32, i32) {
    %c0_i32 = arith.constant 0 : i32
    %c0_i32_0 = arith.constant 0 : i32
    %c0_i32_1 = arith.constant 0 : i32
    return %c0_i32, %c0_i32_0 : i32, i32
  }
  func.func @transform_12(%arg0: i32) -> (i32, i32) {
    %c0_i32 = arith.constant 0 : i32
    %c0_i32_0 = arith.constant 0 : i32
    return %arg0, %c0_i32 : i32, i32
  }
  func.func @transform_13(%arg0: i32) -> (i32, i32) {
    %c0_i32 = arith.constant 0 : i32
    %c0_i32_0 = arith.constant 0 : i32
    return %arg0, %c0_i32 : i32, i32
  }
  func.func @transform_14(%arg0: i32) -> (i32, i32) {
    %c0_i32 = arith.constant 0 : i32
    %c0_i32_0 = arith.constant 0 : i32
    return %arg0, %c0_i32 : i32, i32
  }
}

</mosaic_0001>

<bundles_post_ra>
// kernel: tpu_custom_call.1
= control target key start
LH: loop header
LB: loop body
LE: loop exit
PB: predicated region body
PF: predicated region fallthrough
CT: control target
= control target key end

     0   :  { %20 = vsyncpa [#allocation3], 0  ;;  %s866_s0 = inlined_call_operand.hbm [shape: bf16[8,32], index: 0, kind: input, shape index: {}]   ;;  %s867_s1 = inlined_call_operand.hbm [shape: bf16[8,32], index: 1, kind: input, shape index: {}]   ;;  %s868_s2 = inlined_call_operand.vmem [shape: f32[8,16], index: 2, kind: input, shape index: {}]   ;;  %s869_s3 = inlined_call_operand.vmem [shape: bf16[32,32], index: 3, kind: input, shape index: {}]   ;;  %s870_s4 = inlined_call_operand.vmem [shape: bf16[32,16], index: 4, kind: input, shape index: {}]   ;;  %s871_s5 = inlined_call_operand.vmem [shape: f32[1,16], index: 5, kind: input, shape index: {}]   ;;  %s872_s6 = inlined_call_operand.vmem [shape: bf16[16,32], index: 6, kind: input, shape index: {}]   ;;  %s873_s7 = inlined_call_operand.vmem [shape: f32[1,32], index: 7, kind: input, shape index: {}]   ;;  %s874_s8 = inlined_call_operand.vmem [shape: bf16[16,16], index: 8, kind: input, shape index: {}]   ;;  %s875_s9 = inlined_call_operand.hbm [shape: f32[1,16], index: 9, kind: input, shape index: {}]   ;;  %s876_s10 = inlined_call_operand.vmem [shape: bf16[16,32], index: 10, kind: input, shape index: {}]   ;;  %s877_s11 = inlined_call_operand.vmem [shape: f32[1,32], index: 11, kind: input, shape index: {}]   ;;  %s878_s12 = inlined_call_operand.hbm [shape: f32[8,32], index: 12, kind: output, shape index: {0}]   ;;  %s879_s13 = inlined_call_operand.hbm [shape: f32[8,32], index: 13, kind: output, shape index: {1}]   ;;  %s880_s14 = inlined_call_operand.vmem [shape: f32[8,1], index: 14, kind: output, shape index: {2}]  }
   0x1   :  { %21 = vsyncpa [#allocation6], 0 }
   0x2   :  { %22 = vsyncpa [#allocation4], 0 }
   0x3   :  { %23 = vsyncpa [#allocation10], 0  ;;  %s670_s29 = smov [#allocation5]   ;;  %s671_s15 = smov [#allocation2]  }
   0x4   :  { %s40_s30 = sshll.u32 %s670_s29, 4  ;;  %s30_s16 = sshll.u32 %s671_s15, 4  ;;  %s41_s30 = int_to_ptr.vmem [resolvable:$true] %s40_s30  ;;  %s31_s16 = int_to_ptr.vmem [resolvable:$true] %s30_s16 }
   0x5   :  { %s552_s19 = scalar_lea.hbm %s867_s1, 64 }
   0x6   :  { %p553_p0 = scmp.ne.s32.totalorder %s867_s1, %s552_s19  ;;  %p556_p1 = scmp.lt.u32.totalorder %s552_s19, %s867_s1 }
   0x8   :  { %p558_p2 = pnand %p556_p1, %p553_p0 }
   0xa   :  { %561 = shalt.err (!%p558_p2)
}
   0xb   :  { %s562_s24 = scalar_lea.vmem %s41_s30, 64  ;;  %p567_p4 = scmp.lt.s32.totalorder %s41_s30, %s41_s30 }
   0xc   :  { %p563_p3 = scmp.ne.s32.totalorder %s41_s30, %s562_s24  ;;  %p568_p5 = scmp.lt.s32.totalorder %s562_s24, %s562_s24 }
   0xe   :  { %p569_p6 = por %p568_p5, %p567_p4 }
  0x10   :  { %p570_p7 = pnand %p569_p6, %p563_p3 }
  0x12   :  { %573 = shalt.err (!%p570_p7)
}
  0x13   :  { %43 = dma.hbm_to_vmem [thread:$0]  %s867_s1, 64, %s41_s30, [#allocation6]  }
  0x14   :  { %s574_s29 = scalar_lea.hbm %s866_s0, 64 }
  0x15   :  { %p575_p8 = scmp.ne.s32.totalorder %s866_s0, %s574_s29  ;;  %p578_p9 = scmp.lt.u32.totalorder %s574_s29, %s866_s0 }
  0x17   :  { %p580_p10 = pnand %p578_p9, %p575_p8 }
  0x19   :  { %583 = shalt.err (!%p580_p10)
}
  0x1a   :  { %s584_s20 = scalar_lea.vmem %s31_s16, 64  ;;  %p589_p12 = scmp.lt.s32.totalorder %s31_s16, %s31_s16 }
  0x1b   :  { %p585_p11 = scmp.ne.s32.totalorder %s31_s16, %s584_s20  ;;  %p590_p13 = scmp.lt.s32.totalorder %s584_s20, %s584_s20 }
  0x1d   :  { %p591_p0 = por %p590_p13, %p589_p12 }
  0x1f   :  { %p592_p1 = pnand %p591_p0, %p585_p11 }
  0x21   :  { %595 = shalt.err (!%p592_p1)
}
  0x22   :  { %33 = dma.hbm_to_vmem [thread:$0]  %s866_s0, 64, %s31_s16, [#allocation3]  }
  0x23   :  { %s672_s21 = smov [#allocation7]   ;;  %s596_s25 = scalar_lea.hbm %s875_s9, 16 }
  0x24   :  { %s64_s22 = sshll.u32 %s672_s21, 4  ;;  %p597_p2 = scmp.ne.s32.totalorder %s875_s9, %s596_s25  ;;  %s65_s22 = int_to_ptr.vmem [resolvable:$true] %s64_s22 }
  0x25   :  { %p600_p3 = scmp.lt.u32.totalorder %s596_s25, %s875_s9 }
  0x27   :  { %p602_p4 = pnand %p600_p3, %p597_p2 }
  0x29   :  { %605 = shalt.err (!%p602_p4)
}
  0x2a   :  { %s606_s15 = scalar_lea.vmem %s65_s22, 16  ;;  %s610_s0 = scalar_lea.vmem %s65_s22, 32 }
  0x2b   :  { %p607_p5 = scmp.ne.s32.totalorder %s65_s22, %s606_s15  ;;  %p611_p6 = scmp.lt.s32.totalorder %s65_s22, %s65_s22 }
  0x2c   :  { %p612_p7 = scmp.lt.s32.totalorder %s610_s0, %s606_s15 }
  0x2e   :  { %p613_p8 = por %p612_p7, %p611_p6 }
  0x30   :  { %p614_p9 = pnand %p613_p8, %p607_p5 }
  0x32   :  { %617 = shalt.err (!%p614_p9)
}
  0x33   :  { %67 = dma.hbm_to_vmem [thread:$0]  %s875_s9, 16, %s65_s22, [#allocation6]  }
  0x34   :  { %662 = dma.done.wait [#allocation3], 64  }
  0x35   :  { %663 = vsyncadd [#allocation3], 4294967232 }
  0x36   :  { %664 = dma.done.wait [#allocation6], 80  }
  0x37   :  { %665 = vsyncadd [#allocation6], 4294967216  ;;  %v673_v0 = vmov 0.0   ;;  %vm674_vm0 = vmmov 0   ;;  %v539_v1 = vld [vmem:[%s869_s3] sm:$0xff]   ;;  %v541_v3 = vld [vmem:[%s869_s3 + $0x8] sm:$0xff]  }
  0x38   :  { %496 = vmatprep.subr.bf16.mxu0 %v673_v0  ;;  %504 = vmatprep.subr.bf16.mxu1 %v673_v0  ;;  %v540_v2 = vld [vmem:[%s870_s4] sm:$0xff]   ;;  %v542_v4 = vld [vmem:[%s870_s4 + $0x8] sm:$0xff]   ;;  %vm101_vm1 = vcmask 261120   ;;  %vm230_vm2 = vcmask 130048   ;;  %s675_s27 = smov 112  }
  0x39   :  { %500 = vmatprep.mubr.msk.bf16.mxu0 %vm674_vm0, %v673_v0  ;;  %508 = vmatprep.mubr.msk.bf16.mxu1 %vm674_vm0, %v673_v0  ;;  %v82_v5 = vld [vmem:[#allocation2] sm:$0xf]  ;;  %v83_v6 = vld [vmem:[#allocation5] sm:$0xf]  ;;  %v480_v36 = vld [vmem:[#allocation7] ss:$0 sm:$0xff] }
  0x3a   :  { %497 = vmatpush3.bf16.msra.mxu0 %v539_v1  ;;  %505 = vmatpush3.bf16.msra.mxu1 %v540_v2  ;;  %v543_v7 = vld [vmem:[%s872_s6] sm:$0xff]  }
  0x3b   :  { %498 = vmatprep.subr.bf16.mxu0 %v673_v0  ;;  %506 = vmatprep.subr.bf16.mxu1 %v673_v0  ;;  %v474_v10 = vld [vmem:[%s871_s5] ss:$0 sm:$0xff] }
  0x3c   :  { %v544_v21 = vld [vmem:[%s874_s8] sm:$0xff]  }
  0x3d   :  { %v475_v22 = vld [vmem:[%s873_s7] ss:$0 sm:$0xff]  ;;  %s676_s7 = smov 16  }
  0x3e   :  { %499 = vmatpush3.bf16.msra.mxu0 %v541_v3  ;;  %507 = vmatpush3.bf16.msra.mxu1 %v542_v4  ;;  %v84_v31 = vld [vmem:[%s868_s2] sm:$0xff]  ;;  %s677_s2 = smov [#allocation9]  }
  0x3f   :  { %512 = vmatprep.subr.bf16.mxu0 %v673_v0  ;;  %518 = vmatprep.subr.bf16.mxu1 %v673_v0  ;;  %v545_v42 = vld [vmem:[%s876_s10] sm:$0xff]   ;;  %s450_s10 = sshll.u32 %s677_s2, 4  ;;  %s451_s10 = int_to_ptr.vmem [resolvable:$true] %s450_s10 }
  0x40   :  { %346 = vrot.lane.b32.xlu1 %v480_v36, %s676_s7  ;;  %s618_s0 = scalar_lea.vmem %s451_s10, 128  ;;  %p623_p11 = scmp.lt.s32.totalorder %s451_s10, %s451_s10 }
  0x41   :  { %501 = vmatmul.mubr.msk.bf16.vlgmr.msra.gmra.mrb[0].mxu0 %vm101_vm1, %v82_v5  ;;  %509 = vmatmul.mubr.msk.bf16.vlgmr.msra.gmra.mrb[0].mxu1 %vm101_vm1, %v83_v6  ;;  %p619_p10 = scmp.ne.s32.totalorder %s451_s10, %s618_s0  ;;  %p624_p12 = scmp.lt.s32.totalorder %s618_s0, %s618_s0 }
  0x42   :  { %514 = vmatprep.mubr.msk.bf16.mxu0 %vm674_vm0, %v673_v0  ;;  %520 = vmatprep.mubr.msk.bf16.mxu1 %vm674_vm0, %v673_v0 }
  0x43   :  { %513 = vmatpush3.bf16.msra.mxu0 %v543_v7  ;;  %519 = vmatpush3.bf16.msra.mxu1 %v544_v21  ;;  %p625_p13 = por %p624_p12, %p623_p11 }
  0x44   :  { %524 = vmatprep.subr.bf16.mxu0 %v673_v0 }
  0x45   :  { %p626_p0 = pnand %p625_p13, %p619_p10 }
  0xb2   :  { %v347_v44 = vpop.permute.xlu1 %346 }
 0x114   :  { %v139_v8 = vpop.f32.mrb[0].mxu0  ;;  %v198_v9 = vpop.f32.mrb[0].mxu1 }
 0x115   :  { %v502_v11 = vpop.f32.mrb[1].mxu0  ;;  %v204_v12 = vadd.f32 %v198_v9, %v139_v8  ;;  %v510_v13 = vpop.f32.mrb[1].mxu1 }
 0x116   :  { %v142_v14 = vpop.f32.mrb[2].mxu0  ;;  %v201_v15 = vpop.f32.mrb[2].mxu1 }
 0x117   :  { %v503_v16 = vpop.f32.mrb[3].mxu0  ;;  %v212_v17 = vadd.f32 %v474_v10, %v204_v12  ;;  %v511_v18 = vpop.f32.mrb[3].mxu1 }
 0x119   :  { %546 = vtanh.f32 %v212_v17 }
 0x123   :  { %v547_v19 = vpop.eup %546 }
 0x124   :  { %v214_v20 = vpack.c.bf16 %v547_v19, %v547_v19 }
 0x126   :  { %515 = vmatmul.mubr.msk.bf16.vlgmr.msra.gmra.mrb[4].mxu0 %vm230_vm2, %v214_v20 }
 0x127   :  { %526 = vmatprep.mubr.msk.bf16.mxu0 %vm674_vm0, %v673_v0  ;;  %525 = vmatpush3.bf16.msra.mxu0 %v545_v42 }
 0x1f9   :  { %v268_v23 = vpop.f32.mrb[4].mxu0 }
 0x1fa   :  { %v269_v24 = vadd.f32 %v475_v22, %v268_v23  ;;  %v516_v25 = vpop.f32.mrb[5].mxu0 }
 0x1fb   :  { %v271_v26 = vpop.f32.mrb[6].mxu0 }
 0x1fc   :  { %414 = vst.msk [vmem:[#allocation9] sm:$0xff] %vm101_vm1, %v269_v24  ;;  %v517_v27 = vpop.f32.mrb[7].mxu0  ;;  %v274_v28 = vmul.f32 0.5, %v269_v24  ;;  %v415_v41 = vmul.f32 %v269_v24, %v269_v24 }
 0x1fe   :  { %v275_v29 = vmul.f32 1.442695, %v274_v28 }
 0x200   :  { %548 = vpow2.f32 %v275_v29 }
 0x20a   :  { %v549_v30 = vpop.eup %548 }
 0x20b   :  { %278 = vrot.lane.b32.xlu0 %v549_v30, %s675_s27  ;;  %v421_v51 = vmul.f32 %v549_v30, %v549_v30 }
 0x27d   :  { %v279_v32 = vpop.permute.xlu0 %278 }
 0x27e   :  { %v281_v33 = vmul.f32 %v279_v32, %v84_v31 }
 0x280   :  { %v282_v34 = vadd.f32 %v281_v33, %v269_v24 }
 0x282   :  { %v283_v35 = vpack.c.bf16 %v282_v34, %v282_v34 }
 0x284   :  { %521 = vmatmul.mubr.msk.bf16.vlgmr.msra.gmra.mrb[4].mxu1 %vm230_vm2, %v283_v35 }
 0x357   :  { %v329_v37 = vpop.f32.mrb[4].mxu1 }
 0x358   :  { %336 = vrot.lane.b32.xlu0 %v329_v37, %s676_s7  ;;  %v522_v38 = vpop.f32.mrb[5].mxu1 }
 0x359   :  { %v332_v39 = vpop.f32.mrb[6].mxu1 }
 0x35a   :  { %v523_v40 = vpop.f32.mrb[7].mxu1 }
 0x35c   :  { %417 = vrot.lane.b32.xlu0 %v415_v41, %s676_s7 }
 0x3ca   :  { %v337_v43 = vpop.permute.xlu0 %336 }
 0x3cb   :  { %v339_v45 = vadd.f32 %v337_v43, %v139_v8 }
 0x3cd   :  { %v349_v46 = vadd.f32 %v347_v44, %v339_v45 }
 0x3ce   :  { %v418_v47 = vpop.permute.xlu0 %417 }
 0x3cf   :  { %550 = vtanh.f32 %v349_v46  ;;  %v420_v50 = vsub.f32 %v269_v24, %v418_v47 }
 0x3d1   :  { %v422_v52 = vsub.f32 %v420_v50, %v421_v51 }
 0x3d9   :  { %v551_v48 = vpop.eup %550 }
 0x3da   :  { %v351_v49 = vpack.c.bf16 %v551_v48, %v551_v48 }
 0x3dc   :  { %362 = vrot.lane.b32.xlu1 %v351_v49, %s675_s27 }
 0x3e0   :  { %424 = vrot.lane.b32.xlu1 %v422_v52, %s675_s27 }
 0x44e   :  { %v363_v53 = vpop.permute.xlu1 %362 }
 0x44f   :  { %527 = vmatmul.mubr.msk.bf16.vlgmr.msra.gmra.mrb[8].mxu0 %vm230_vm2, %v363_v53 }
 0x452   :  { %v425_v54 = vpop.permute.xlu1 %424 }
 0x453   :  { %v427_v55 = vsel %vm230_vm2, %v425_v54, 0.0 }
 0x454   :  { %428 = vadd.xlane.f32.xlu0 %v427_v55 }
 0x455   :  { %629 = shalt.err (!%p626_p0)
}
 0x456   :  { %s630_s18 = scalar_lea.hbm %s879_s13, 128 }
 0x457   :  { %p631_p1 = scmp.ne.s32.totalorder %s879_s13, %s630_s18  ;;  %p634_p2 = scmp.lt.u32.totalorder %s630_s18, %s879_s13 }
 0x459   :  { %p636_p3 = pnand %p634_p2, %p631_p1 }
 0x45b   :  { %639 = shalt.err (!%p636_p3)
}
 0x45c   :  { %453 = dma.vmem_to_hbm [thread:$0]  %s451_s10, 128, %s879_s13, [#allocation10]   ;;  %vm432_vm3 = vcmask 7168   ;;  %v481_v59 = vld [vmem:[%s877_s11] ss:$0 sm:$0xff] }
 0x45d   :  { %s678_s24 = smov [#allocation8]  }
 0x45e   :  { %s440_s6 = sshll.u32 %s678_s24, 4  ;;  %s441_s6 = int_to_ptr.vmem [resolvable:$true] %s440_s6 }
 0x45f   :  { %s640_s13 = scalar_lea.vmem %s441_s6, 128  ;;  %p645_p5 = scmp.lt.s32.totalorder %s441_s6, %s441_s6 }
 0x460   :  { %p641_p4 = scmp.ne.s32.totalorder %s441_s6, %s640_s13  ;;  %p646_p6 = scmp.lt.s32.totalorder %s640_s13, %s640_s13 }
 0x462   :  { %p647_p7 = por %p646_p6, %p645_p5 }
 0x464   :  { %p648_p8 = pnand %p647_p7, %p641_p4 }
 0x4e1   :  { %v429_v56 = vpop.xlane.xlu0 %428 }
 0x4e2   :  { %v430_v57 = vadd.f32 16.0, %v429_v56 }
 0x4e4   :  { %v431_v58 = vmul.f32 -0.5, %v430_v57 }
 0x4e6   :  { %433 = vst.msk [vmem:[%s880_s14] sm:$0xff] %vm432_vm3, %v431_v58 }
 0x522   :  { %v407_v60 = vpop.f32.mrb[8].mxu0 }
 0x523   :  { %v408_v61 = vadd.f32 %v481_v59, %v407_v60  ;;  %v528_v62 = vpop.f32.mrb[9].mxu0 }
 0x524   :  { %v410_v63 = vpop.f32.mrb[10].mxu0 }
 0x525   :  { %413 = vst.msk [vmem:[#allocation8] sm:$0xff] %vm101_vm1, %v408_v61  ;;  %v529_v0 = vpop.f32.mrb[11].mxu0 }
 0x526   :  { %651 = shalt.err (!%p648_p8)
}
 0x527   :  { %s652_s11 = scalar_lea.hbm %s878_s12, 128 }
 0x528   :  { %p653_p9 = scmp.ne.s32.totalorder %s878_s12, %s652_s11  ;;  %p656_p10 = scmp.lt.u32.totalorder %s652_s11, %s878_s12 }
 0x52a   :  { %p658_p11 = pnand %p656_p10, %p653_p9 }
 0x52c   :  { %661 = shalt.err (!%p658_p11)
}
 0x52d   :  { %443 = dma.vmem_to_hbm [thread:$0]  %s441_s6, 128, %s878_s12, [#allocation4]  }
 0x52e   :  { %666 = dma.done.wait [#allocation4], 128  }
 0x52f   :  { %667 = vsyncadd [#allocation4], 4294967168 }
 0x530   :  { %668 = dma.done.wait [#allocation10], 128  }
 0x531   :  { %669 = vsyncadd [#allocation10], 4294967168 }
 0x532   :  { %464 = vsyncpa [#allocation3], 1 }
 0x533   :  { %465 = vsyncpa [#allocation6], 1 }
 0x534   :  { %466 = vsyncpa [#allocation4], 1 }
 0x535   :  { %467 = vsyncpa [#allocation10], 1 }

</bundles_post_ra>
